<compile_context>
chip_gen: v7x
topology: tpu7x:2x2x1
jax: 0.10.0
libtpu: 0.0.40
codegen_flags: <defaults>
</compile_context>

<pallas_src>
import jax
import jax.numpy as jnp
from jax.experimental import pallas as pl
from jax.experimental.pallas import tpu as pltpu


def _round_up(v, m):
    return (v + m - 1) // m * m


def _vmem_budget_bytes():
    """Per-generation scoped-VMEM budget (physical minus headroom)."""
    try:
        phys = int(pltpu.get_tpu_info().vmem_capacity_bytes)
    except Exception:
        phys = 64 << 20  # v7x floor — safe on every generation
    return max(phys - (8 << 20), 32 << 20)


def _choose_tile_n(C, N, x_itemsize, attn_itemsize, budget):
    """Pick the spatial tile TN and the attention buffer count."""
    LANE = 128
    n128 = _round_up(N, LANE)

    # ~2 MiB per streamed (C, TN) tile to sit near the HBM roofline.
    target = 2 << 20
    tn = _round_up(max(LANE, target // max(C * x_itemsize, 1)), LANE)
    tn = min(tn, n128)

    # Account for pipelining: attention double-buffered unless it is huge,
    # x and out tiles double-buffered.
    attn_bufs = 2
    if 2 * C * C * attn_itemsize > budget // 2:
        attn_bufs = 1  # block index changes once per batch -> Buffered(1) is cheap
    attn_bytes = attn_bufs * C * C * attn_itemsize

    avail = max(budget - attn_bytes, 0)
    tn_cap = (avail // max(4 * C * x_itemsize, 1)) // LANE * LANE
    if tn_cap >= LANE:
        tn = min(tn, tn_cap)
    tn = max(tn, LANE)
    return tn, attn_bufs


def cam_use_kernel(attn_ref, x_ref, o_ref):
    # attn_ref : (1, C, C)   gamma-fused attention (resident across the N axis)
    # x_ref    : (1, C, TN)  streamed spatial tile
    # o_ref    : (1, C, TN)  streamed spatial tile
    a = attn_ref[0]
    xb = x_ref[0]
    out = jnp.dot(a, xb, preferred_element_type=jnp.float32)  # MXU, f32 acc
    o_ref[0] = out.astype(o_ref.dtype)


def cam_use_forward(x, attention, gamma):
    """x: (B, C, H, W), attention: (B, C, C), gamma: (1,). Returns (B, C, H, W).

    Output dtype follows x.dtype: pass bf16 tensors on v6e/v7x to halve HBM
    traffic (the matmul still accumulates in f32).
    """
    B, C, H, W = x.shape
    N = H * W
    assert attention.shape == (B, C, C)

    # Fold gamma and the residual into the (tiny, B*C*C) attention matrix:
    #   gamma * (A @ x) + x == (gamma * A + I) @ x
    gamma_f = jnp.reshape(gamma, ()).astype(jnp.float32)
    eye = jnp.eye(C, dtype=jnp.float32)[None]
    attn_fused = (gamma_f * attention.astype(jnp.float32) + eye).astype(attention.dtype)

    x_flat = x.reshape(B, C, N)

    x_itemsize = jnp.dtype(x.dtype).itemsize
    attn_itemsize = jnp.dtype(attention.dtype).itemsize
    budget = _vmem_budget_bytes()
    TN, attn_bufs = _choose_tile_n(C, N, x_itemsize, attn_itemsize, budget)

    # Megacore: make sure a B == 1 case still yields >= 2 grid points.
    if B == 1 and pl.cdiv(N, TN) < 2 and N > 128:
        TN = max(128, _round_up((N + 1) // 2, 128))

    num_n = pl.cdiv(N, TN)

    # Scoped-VMEM limit derived from the real (multi-buffered) footprint.
    need = attn_bufs * C * C * attn_itemsize + 4 * C * TN * x_itemsize
    vmem_limit = int(min(max(need + (8 << 20), 32 << 20), budget))

    attn_kwargs = {}
    if attn_bufs == 1:
        # Large-C case (e.g. C >= 2048 f32): single-buffer the resident
        # attention block — its index only changes once per batch.
        attn_kwargs["pipeline_mode"] = pl.Buffered(1)

    cost = pl.CostEstimate(
        flops=2 * B * C * C * N,
        transcendentals=0,
        bytes_accessed=2 * B * C * N * x_itemsize + B * C * C * attn_itemsize,
    )

    out_flat = pl.pallas_call(
        cam_use_kernel,
        out_shape=jax.ShapeDtypeStruct((B, C, N), x.dtype),
        grid_spec=pltpu.PrefetchScalarGridSpec(
            num_scalar_prefetch=0,
            grid=(B, num_n),
            in_specs=[
                # (C, C) attention: block index constant along the N axis.
                pl.BlockSpec((1, C, C), lambda b, n: (b, 0, 0), **attn_kwargs),
                # Lane-aligned streamed x tile; ragged tail handled by Pallas.
                pl.BlockSpec((1, C, TN), lambda b, n: (b, 0, n)),
            ],
            out_specs=pl.BlockSpec((1, C, TN), lambda b, n: (b, 0, n)),
        ),
        compiler_params=pltpu.CompilerParams(
            dimension_semantics=("parallel", "parallel"),
            vmem_limit_bytes=vmem_limit,
        ),
        cost_estimate=cost,
    )(attn_fused, x_flat)

    return out_flat.reshape(B, C, H, W)


def cam_use_reference(x, attention, gamma):
    """Pure-JAX reference mirroring the PyTorch CAM_Use.forward."""
    B, C, H, W = x.shape
    x_flat = x.astype(jnp.float32).reshape(B, C, H * W)
    out = jnp.einsum('bij,bjn->bin', attention.astype(jnp.float32), x_flat)
    return gamma.reshape(()) * out.reshape(B, C, H, W) + x.astype(jnp.float32)


if __name__ == "__main__":
    key = jax.random.PRNGKey(0)
    B, C, H, W = 2, 16, 16, 16          # N = 256, channel attention (16, 16)

    k_x, k_a = jax.random.split(key, 2)
    x = jax.random.normal(k_x, (B, C, H, W), dtype=jnp.float32)
    # Realistic channel-attention input: row-softmax of a random energy matrix.
    energy = jax.random.normal(k_a, (B, C, C), dtype=jnp.float32)
    attention = jax.nn.softmax(energy, axis=-1)
    # NOTE: the module inits gamma to 0 (output == x); use 0.5 so the attention
    # path is actually exercised numerically.
    gamma = jnp.array([0.5], dtype=jnp.float32)

    ref = cam_use_reference(x, attention, gamma)

    # f32 path.
    out = jax.block_until_ready(cam_use_forward(x, attention, gamma))
    assert out.shape == (B, C, H, W)
    assert jnp.allclose(out, ref, atol=1e-4, rtol=1e-4), "f32 mismatch vs reference"

    # bf16 streaming path (halves HBM traffic on v6e/v7x; f32 accumulation kept).
    out_bf16 = jax.block_until_ready(
        cam_use_forward(x.astype(jnp.bfloat16), attention.astype(jnp.bfloat16), gamma))
    assert out_bf16.dtype == jnp.bfloat16
    assert jnp.allclose(out_bf16.astype(jnp.float32), ref, atol=5e-2, rtol=5e-2), \
        "bf16 mismatch vs reference"

    print("KERNEL_OK")
</pallas_src>

<mosaic_0001>
module attributes {stable_mosaic.version = 11 : i64} {
  func.func @cam_use_kernel(%arg0: i32, %arg1: i32, %arg2: memref<1x16x16xf32, #tpu.memory_space<vmem>>, %arg3: memref<1x16x256xf32, #tpu.memory_space<vmem>>, %arg4: memref<1x16x256xf32, #tpu.memory_space<vmem>>) attributes {dimension_semantics = [#tpu.dimension_semantics<parallel>, #tpu.dimension_semantics<parallel>], iteration_bounds = array<i64: 2, 1>, scalar_prefetch = 0 : i64, scratch_operands = 0 : i64, tpu.core_type = #tpu.core_type<tc>, window_params = [{transform_indices = @transform_0, window_bounds = array<i64: 1, 16, 16>}, {transform_indices = @transform_1, window_bounds = array<i64: 1, 16, 256>}, {transform_indices = @transform_2, window_bounds = array<i64: 1, 16, 256>}]} {
    %c0 = arith.constant 0 : index
    %c0_0 = arith.constant 0 : index
    %c0_1 = arith.constant 0 : index
    %0 = vector.load %arg2[%c0, %c0_0, %c0_1] : memref<1x16x16xf32, #tpu.memory_space<vmem>>, vector<1x16x16xf32>
    %1 = vector.shape_cast %0 : vector<1x16x16xf32> to vector<16x16xf32>
    %c0_2 = arith.constant 0 : index
    %c0_3 = arith.constant 0 : index
    %c0_4 = arith.constant 0 : index
    %2 = vector.load %arg3[%c0_2, %c0_3, %c0_4] : memref<1x16x256xf32, #tpu.memory_space<vmem>>, vector<1x16x256xf32>
    %3 = vector.shape_cast %2 : vector<1x16x256xf32> to vector<16x256xf32>
    %cst = arith.constant dense<0.000000e+00> : vector<16x256xf32>
    %4 = tpu.matmul %1, %3, %cst {dimension_numbers = #tpu.dot_dimension_numbers<[1], [0], [0], [1], [0, 0, 1, 1], [], []>} : vector<16x16xf32>, vector<16x256xf32>, vector<16x256xf32> -> vector<16x256xf32>
    %c0_5 = arith.constant 0 : index
    %c0_6 = arith.constant 0 : index
    %c0_7 = arith.constant 0 : index
    %5 = vector.load %arg4[%c0_5, %c0_6, %c0_7] : memref<1x16x256xf32, #tpu.memory_space<vmem>>, vector<1x16x256xf32>
    %6 = vector.shape_cast %5 : vector<1x16x256xf32> to vector<16x256xf32>
    %7 = vector.shape_cast %4 : vector<16x256xf32> to vector<1x16x256xf32>
    tpu.vector_store %arg4[%c0_5, %c0_6, %c0_7], %7 {strides = array<i32>} : memref<1x16x256xf32, #tpu.memory_space<vmem>>, vector<1x16x256xf32>,
    return
  }
  func.func @transform_0(%arg0: i32, %arg1: i32) -> (i32, i32, i32) {
    %c0_i32 = arith.constant 0 : i32
    %c0_i32_0 = arith.constant 0 : i32
    %c0_i32_1 = arith.constant 0 : i32
    return %arg0, %c0_i32, %c0_i32_0 : i32, i32, i32
  }
  func.func @transform_1(%arg0: i32, %arg1: i32) -> (i32, i32, i32) {
    %c0_i32 = arith.constant 0 : i32
    %c0_i32_0 = arith.constant 0 : i32
    return %arg0, %c0_i32, %arg1 : i32, i32, i32
  }
  func.func @transform_2(%arg0: i32, %arg1: i32) -> (i32, i32, i32) {
    %c0_i32 = arith.constant 0 : i32
    %c0_i32_0 = arith.constant 0 : i32
    return %arg0, %c0_i32, %arg1 : i32, i32, i32
  }
}

</mosaic_0001>

<bundles_post_ra>
// kernel: tpu_custom_call.1
= control target key start
LH: loop header
LB: loop body
LE: loop exit
PB: predicated region body
PF: predicated region fallthrough
CT: control target
= control target key end

     0   :  { %7 = vsyncpa [#allocation3], 0  ;;  %s944_s0 = inlined_call_operand.hbm [shape: f32[2,16,16], index: 0, kind: input, shape index: {}]   ;;  %s945_s1 = inlined_call_operand.hbm [shape: f32[2,16,256], index: 1, kind: input, shape index: {}]   ;;  %s946_s2 = inlined_call_operand.hbm [shape: f32[2,16,256], index: 2, kind: output, shape index: {}]  }
   0x1   :  { %9 = vsyncpa [#allocation3 + $0x1], 0 }
   0x2   :  { %10 = vsyncpa [#allocation6], 0 }
   0x3   :  { %12 = vsyncpa [#allocation6 + $0x1], 0 }
   0x4   :  { %13 = vsyncpa [#allocation4], 0 }
   0x5   :  { %15 = vsyncpa [#allocation4 + $0x1], 0  ;;  %s719_s9 = smov 0   ;;  %s721_s10 = smov 0  }
   0x6   :  { %s723_s11 = smov 0   ;;  %s725_s12 = smov 0  }
   0x7   :  { %s727_s13 = smov 0   ;;  %s729_s14 = smov 0  }
   0x8 LB: > { %s442_s15 = sadd.s32 4294967295, %s692_s14   ;;  %s443_s16 = sadd.s32 4294967294, %s692_s14   ;;  %s692_s14 = sphi %s729_s14, %s21_s14   ;;  %s688_s13 = sphi %s727_s13, %s964_s13   ;;  %s684_s12 = sphi %s725_s12, %s963_s12   ;;  %s680_s11 = sphi %s723_s11, %s962_s11   ;;  %s676_s10 = sphi %s721_s10, %s961_s10   ;;  %s672_s9 = sphi %s719_s9, %s960_s9  }
   0x9   : > { %s33_s17 = sadd.s32 1, %s688_s13  ;;  %s40_s18 = sadd.s32 1, %s680_s11 }
   0xa   : > { %p35_p0 = scmp.ge.s32.totalorder %s33_s17, 2  ;;  %p47_p1 = scmp.ne.s32.totalorder %s680_s11, %s676_s10 }
   0xb   : > { %p48_p2 = scmp.eq.s32.totalorder %s692_s14, 0  ;;  %p53_p3 = scmp.ne.s32.totalorder %s676_s10, %s672_s9 }
   0xc   : > { %s966_s17 = smov (%p35_p0, %s33_s17), 0  ;;  %p54_p5 = scmp.eq.s32.totalorder %s442_s15, 0 }
   0xd   : > { %p760_p4 = por %p48_p2, %p47_p1  ;;  %s37_s20 = ssub.s32 %s688_s13, %s966_s17 }
   0xe   : > { %p107_p6 = scmp.eq.s32.totalorder %s442_s15, 1  ;;  %p38_p7 = scmp.eq.s32.totalorder %s37_s20, 0 }
   0xf   : > { %p766_p8 = por %p54_p5, %p53_p3  ;;  %p113_p10 = scmp.eq.s32.totalorder %s443_s16, 1 }
  0x10   : > { %p770_p9 = por %p107_p6, %p47_p1  ;;  %p489_p13 = scmp.lt.s32.totalorder %s692_s14, 2 }
  0x11   : > { %s950_s21 = scalar_select %p766_p8, 1, 0 }
  0x12   : > { %s951_s22 = scalar_select %p770_p9, 1, 0 }
  0x13   : > { %s775_s23 = scalar_select %p38_p7, %s680_s11, %s40_s18  }
  0x14   : > { %p777_p11 = por %p113_p10, %p53_p3  ;;  %s784_s25 = sand.u32 1, %s680_s11  }
  0x15   : > { %s446_s26 = sshll.u32 %s784_s25, 4  ;;  %s463_s27 = sshll.u32 %s688_s13, 8 }
  0x16   : > { %s952_s24 = scalar_select %p777_p11, 1, 0 }
  0x17   : > { %s791_s30 = scalar_lea.hbm %s944_s0, %s463_s27  ;;  %s137_s3 = scalar_lea.vmem [#allocation2], %s446_s26 }
  0x18   : > { %s144_s4 = sshll.u32 %s137_s3, 4  ;;  %p797_p0 = pnand %p489_p13, %p760_p4  ;;  %s793_s4 = int_to_ptr.vmem [resolvable:$true] %s144_s4 }
  0x19   : > { %s134_s6 = scalar_lea.sflag [#allocation3], %s784_s25  ;;  %s546_s7 = scalar_lea.hbm %s791_s30, 256 }
  0x1a   : > { %p547_p2 = scmp.ne.s32.totalorder %s791_s30, %s546_s7  ;;  %p548_p3 = pneg %p797_p0 }
  0x1b   : > { %s551_s16 = scalar_lea.hbm %s944_s0, 512  ;;  %p552_p4 = scmp.lt.u32.totalorder %s791_s30, %s944_s0 }
  0x1c   : > { %p549_p5 = pnand %p548_p3, %p547_p2  ;;  %p553_p7 = scmp.lt.u32.totalorder %s551_s16, %s546_s7 }
  0x1d   : > { %p555_p13 = scmp.lt.u32.totalorder %s546_s7, %s791_s30 }
  0x1e   : > { %p550_p6 = pneg %p549_p5  ;;  %p554_p10 = por %p553_p7, %p552_p4 }
  0x20   : > { %p556_p12 = por %p555_p13, %p554_p10 }
  0x22   : > { %p557_p1 = pnand %p556_p12, %p550_p6 }
  0x24   : > { %560 = shalt.err (!%p557_p1)
}
  0x25   : > { %s561_s20 = scalar_lea.vmem %s793_s4, 256  ;;  %s694_s26 = smov [#allocation2]  }
  0x26   : > { %p562_p2 = scmp.ne.s32.totalorder %s793_s4, %s561_s20  ;;  %s566_s27 = sshll.u32 %s694_s26, 4  ;;  %s567_s27 = int_to_ptr.vmem [resolvable:$false] %s566_s27 }
  0x27   : > { %s568_s28 = scalar_lea.vmem %s567_s27, 512  ;;  %p569_p9 = scmp.lt.s32.totalorder %s793_s4, %s567_s27 }
  0x28   : > { %p564_p5 = pnand %p562_p2, %p548_p3  ;;  %p570_p4 = scmp.lt.s32.totalorder %s568_s28, %s561_s20 }
  0x2a   : > { %p565_p11 = pneg %p564_p5  ;;  %p571_p7 = por %p570_p4, %p569_p9 }
  0x2c   : > { %p572_p10 = pnand %p571_p7, %p565_p11 }
  0x2e   : > { %575 = shalt.err (!%p572_p10)
}
  0x2f   : > { %s695_s29 = smov 128   ;;  %s696_s3 = smov 8  }
  0x30   : > { %481 = dma.hbm_to_vmem [thread:$0]  (!%p797_p0), %s791_s30, 256, %s793_s4, %s134_s6, %s695_s29, %s695_s29, %s696_s3  }
  0x31   : > { %p175_p12 = scmp.lt.s32.totalorder %s692_s14, 3  ;;  %s449_s7 = sshll.u32 %s784_s25, 5 }
  0x32   : > { %s464_s8 = sshll.u32 %s688_s13, 9  ;;  %p954_p9 = scmp.ge.s32.totalorder %s692_s14, 1 }
  0x33   : > { %s842_s19 = scalar_lea.hbm %s945_s1, %s464_s8  ;;  %s158_s20 = scalar_lea.vmem [#allocation5], %s449_s7 }
  0x34   : > { %p835_p11 = pnand %p954_p9, %p175_p12  ;;  %s167_s26 = sshll.u32 %s158_s20, 4  ;;  %s844_s26 = int_to_ptr.vmem [resolvable:$true] %s167_s26 }
  0x35   : > { %s155_s30 = scalar_lea.sflag [#allocation6], %s784_s25  ;;  %s576_s4 = scalar_lea.hbm %s842_s19, 512 }
  0x36   : > { %p577_p1 = scmp.ne.s32.totalorder %s842_s19, %s576_s4  ;;  %s581_s28 = scalar_lea.hbm %s945_s1, 1024 }
  0x37   : > { %p582_p2 = scmp.lt.u32.totalorder %s842_s19, %s945_s1  ;;  %p583_p5 = scmp.lt.u32.totalorder %s581_s28, %s576_s4 }
  0x38   : > { %p579_p6 = pnand %p577_p1, %p548_p3  ;;  %p585_p7 = scmp.lt.u32.totalorder %s576_s4, %s842_s19 }
  0x39   : > { %p584_p4 = por %p583_p5, %p582_p2 }
  0x3a   : > { %p580_p13 = pneg %p579_p6 }
  0x3b   : > { %p586_p10 = por %p585_p7, %p584_p4 }
  0x3d   : > { %p587_p12 = pnand %p586_p10, %p580_p13 }
  0x3f   : > { %590 = shalt.err (!%p587_p12)
}
  0x40   : > { %s591_s7 = scalar_lea.vmem %s844_s26, 512  ;;  %s697_s8 = smov [#allocation5]  }
  0x41   : > { %p592_p9 = scmp.ne.s32.totalorder %s844_s26, %s591_s7  ;;  %s596_s16 = sshll.u32 %s697_s8, 4  ;;  %s597_s16 = int_to_ptr.vmem [resolvable:$false] %s596_s16 }
  0x42   : > { %s598_s18 = scalar_lea.vmem %s597_s16, 1024  ;;  %p599_p8 = scmp.lt.s32.totalorder %s844_s26, %s597_s16 }
  0x43   : > { %p594_p1 = pnand %p592_p9, %p548_p3  ;;  %p600_p2 = scmp.lt.s32.totalorder %s598_s18, %s591_s7 }
  0x45   : > { %p595_p6 = pneg %p594_p1  ;;  %p601_p5 = por %p600_p2, %p599_p8 }
  0x47   : > { %p602_p4 = pnand %p601_p5, %p595_p6 }
  0x49   : > { %605 = shalt.err (!%p602_p4)
}
  0x4a   : > { %s698_s20 = smov 256   ;;  %s699_s4 = smov 16  }
  0x4b   : > { %484 = dma.hbm_to_vmem [thread:$0]  (!%p797_p0), %s842_s19, 512, %s844_s26, %s155_s30, %s698_s20, %s698_s20, %s699_s4  }
  0x4c   : > { %179 = sbr.rel (%p835_p11) target bundleno = 322 (0x142), region = 28  ;;  %s875_s6 = sand.u32 (!%p835_p11), 1, %s676_s10  }
  0x4d   : > { %s453_s27 = sshll.u32 (!%p835_p11), %s875_s6, 4  ;;  %s182_s28 = scalar_lea.sflag (!%p835_p11), [#allocation3], %s875_s6 }
  0x4e   : > { %s185_s29 = scalar_lea.vmem (!%p835_p11), [#allocation2], %s453_s27  ;;  %p956_p8 = scmp.ne.s32.totalorder (!%p835_p11), %s950_s21, 0 }
  0x53   : > { %659 = dma.done.wait (%p956_p8), %s182_s28, 256  }
  0x54   : > { %661 = vsyncadd (%p956_p8), %s182_s28, 4294967040  ;;  %s454_s25 = sshll.u32 %s875_s6, 5  ;;  %s191_s5 = scalar_lea.sflag [#allocation6], %s875_s6 }
  0x55   : > { %s194_s15 = scalar_lea.vmem [#allocation5], %s454_s25 }
  0x56   : > { %663 = dma.done.wait (%p956_p8), %s191_s5, 512  }
  0x57   : > { %665 = vsyncadd (%p956_p8), %s191_s5, 4294966784  ;;  %v700_v0 = vmov 0.0   ;;  %v225_v1 = vld [vmem:[%s194_s15 + $0x8] sm:$0xff]  ;;  %v227_v2 = vld [vmem:[%s194_s15 + $0x18] sm:$0xff]  ;;  %vm228_vm0 = vcmask 130048   ;;  %s219_s21 = scalar_lea.vmem [#allocation7], %s454_s25 }
  0x58   : > { %299 = vmatprep.mubr.f32.mxu0 %v700_v0  ;;  %305 = vmatprep.mubr.f32.mxu1 %v700_v0  ;;  %v224_v3 = vld [vmem:[%s194_s15] sm:$0xff]  ;;  %v466_v4 = vpack.c.bf16 %v227_v2, %v225_v1  ;;  %v226_v5 = vld [vmem:[%s194_s15 + $0x10] sm:$0xff]  ;;  %v223_v8 = vld [vmem:[%s185_s29 + $0x8] sm:$0xff]  ;;  %s332_s19 = sshll.u32 %s219_s21, 4  ;;  %s465_s26 = sshll.u32 %s684_s12, 9  ;;  %s890_s19 = int_to_ptr.vmem [resolvable:$true] %s332_s19 }
  0x59   : > { %v468_v6 = vpack.c.bf16 %v226_v5, %v224_v3  ;;  %v222_v7 = vld [vmem:[%s185_s29] sm:$0xff]  ;;  %s895_s7 = scalar_lea.hbm %s946_s2, %s465_s26  ;;  %s317_s8 = scalar_lea.sflag [#allocation4], %s875_s6 }
  0x5a   : > { %467 = vmatprep.subr.bf16.mxu0 %v466_v4  ;;  %470 = vmatprep.subr.bf16.mxu1 %v466_v4  ;;  %s606_s12 = scalar_lea.vmem %s890_s19, 512  ;;  %p957_p3 = scmp.ne.s32.totalorder %s951_s22, 0 }
  0x5b   : > { %469 = vmatpush1.bf16.msra.mxu0 %v468_v6  ;;  %471 = vmatpush1.bf16.msra.mxu1 %v468_v6  ;;  %p607_p0 = scmp.ne.s32.totalorder %s890_s19, %s606_s12  ;;  %s701_s16 = smov [#allocation7]  }
  0x5c   : > { %s610_s18 = sshll.u32 %s701_s16, 4  ;;  %s611_s18 = int_to_ptr.vmem [resolvable:$false] %s610_s18 }
  0x5d   : > { %p608_p11 = pnand %p607_p0, %p957_p3  ;;  %s612_s20 = scalar_lea.vmem %s611_s18, 1024 }
  0x5e   : > { %456 = vmatmul.mubr.msk.f32.vlgmr.msra.gmra.mrb[0].mxu0 %vm228_vm0, %v222_v7  ;;  %457 = vmatmul.mubr.msk.f32.vlgmr.msra.gmra.mrb[0].mxu1 %vm228_vm0, %v223_v8  ;;  %p613_p7 = scmp.lt.s32.totalorder %s890_s19, %s611_s18  ;;  %p614_p10 = scmp.lt.s32.totalorder %s612_s20, %s606_s12 }
  0x5f   : > { %p609_p13 = pneg %p608_p11 }
  0x60   : > { %p615_p12 = por %p614_p10, %p613_p7 }
  0x62   : > { %p616_p9 = pnand %p615_p12, %p609_p13 }
 0x131   : > { %v301_v9 = vpop.f32.mrb[0].mxu0  ;;  %v307_v10 = vpop.f32.mrb[0].mxu1 }
 0x132   : > { %312 = vst [vmem:[%s219_s21] sm:$0xff] %v301_v9  ;;  %314 = vst [vmem:[%s219_s21 + $0x10] sm:$0xff] %v307_v10  ;;  %v303_v11 = vpop.f32.mrb[1].mxu0  ;;  %v309_v12 = vpop.f32.mrb[1].mxu1 }
 0x133   : > { %313 = vst [vmem:[%s219_s21 + $0x8] sm:$0xff] %v303_v11  ;;  %315 = vst [vmem:[%s219_s21 + $0x18] sm:$0xff] %v309_v12 }
 0x134   : > { %619 = shalt.err (!%p616_p9)
}
 0x135   : > { %s620_s4 = scalar_lea.hbm %s895_s7, 512  ;;  %s624_s29 = scalar_lea.hbm %s946_s2, 1024 }
 0x136   : > { %p621_p1 = scmp.ne.s32.totalorder %s895_s7, %s620_s4  ;;  %p625_p5 = scmp.lt.u32.totalorder %s895_s7, %s946_s2 }
 0x137   : > { %p626_p4 = scmp.lt.u32.totalorder %s624_s29, %s620_s4  ;;  %p628_p0 = scmp.lt.u32.totalorder %s620_s4, %s895_s7 }
 0x138   : > { %p622_p6 = pnand %p621_p1, %p957_p3 }
 0x139   : > { %p627_p8 = por %p626_p4, %p625_p5 }
 0x13a   : > { %p623_p2 = pneg %p622_p6 }
 0x13b   : > { %p629_p11 = por %p628_p0, %p627_p8 }
 0x13d   : > { %p630_p13 = pnand %p629_p11, %p623_p2 }
 0x13f   : > { %633 = shalt.err (!%p630_p13)
}
 0x140   : > { %s702_s15 = smov 256   ;;  %s703_s21 = smov 16  }
 0x141   : > { %476 = dma.vmem_to_hbm [thread:$0]  (%p957_p3), %s890_s19, 512, %s895_s7, %s317_s8, %s702_s15, %s702_s15, %s703_s21  }
 0x142 PF: > { %s347_s26 = sand.u32 1, %s672_s9   ;;  %p958_p7 = scmp.ne.s32.totalorder %s952_s24, 0 }
 0x143   : > { %p959_p10 = scmp.ge.s32.totalorder %s692_s14, 2  ;;  %s348_s30 = scalar_lea.sflag [#allocation4], %s347_s26 }
 0x145   : > { %p486_p12 = pnand %p959_p10, %p958_p7 }
 0x147   : > { %667 = dma.done.wait (!%p486_p12), %s348_s30, 512  }
 0x148   : > { %669 = vsyncadd (!%p486_p12), %s348_s30, 4294966784  ;;  %s21_s14 = sadd.s32 1, %s692_s14   ;;  %s960_s9 = smov %s676_s10 }
 0x149   : > { %p18_p9 = scmp.ge.s32.totalorder %s21_s14, 4   ;;  %s961_s10 = smov %s680_s11 }
 0x14a   : > { %s962_s11 = smov %s775_s23  ;;  %s963_s12 = smov %s688_s13 }
 0x14b   : > { %s964_s13 = smov %s966_s17  ;;  %20 = sbr.rel (!%p18_p9) target bundleno = 8 (0x8), region = 86 }
 0x152   :  { %353 = vsyncpa [#allocation3], 1 }
 0x153   :  { %355 = vsyncpa [#allocation3 + $0x1], 1 }
 0x154   :  { %356 = vsyncpa [#allocation6], 1 }
 0x155   :  { %358 = vsyncpa [#allocation6 + $0x1], 1 }
 0x156   :  { %359 = vsyncpa [#allocation4], 1 }
 0x157   :  { %361 = vsyncpa [#allocation4 + $0x1], 1 }

</bundles_post_ra>
